<compile_context>
chip_gen: v7x
topology: tpu7x:2x2x1
jax: 0.10.0
libtpu: 0.0.40
codegen_flags: <defaults>
</compile_context>

<pallas_src>
import jax
import jax.numpy as jnp
from jax.experimental import pallas as pl
from jax.experimental.pallas import tpu as pltpu


def _cat_kernel(x1_ref, x2_ref, o_ref):
    # Assemble the full (R, 2C+2) row in vregs (lane-dense w.r.t. the output
    # ref's own layout) and issue a single full-ref store.
    # v3 == v1[:, 0:2] == x1[:, 0:2]; v2 (the oversized slice) is a no-op.
    o_ref[...] = jnp.concatenate(
        [x1_ref[...], x2_ref[...], x1_ref[:, 0:2]], axis=1
    )


def model_forward(x1, x2, x3=None, x4=None):
    # x3, x4 are unused by the reference module's forward.
    R, C = x1.shape
    assert x2.shape == (R, C)
    assert C >= 2  # v3 = v1[:, 0:2] requires at least 2 columns in x1
    out_cols = 2 * C + 2

    return pl.pallas_call(
        _cat_kernel,
        out_shape=jax.ShapeDtypeStruct((R, out_cols), x1.dtype),
        in_specs=[
            pl.BlockSpec(memory_space=pltpu.MemorySpace.VMEM),
            pl.BlockSpec(memory_space=pltpu.MemorySpace.VMEM),
        ],
        out_specs=pl.BlockSpec(memory_space=pltpu.MemorySpace.VMEM),
    )(x1, x2)


if __name__ == "__main__":
    key = jax.random.PRNGKey(0)
    k1, k2, k3, k4 = jax.random.split(key, 4)

    # Shapes implied by the module: x1, x2 are (3, 64). x3, x4 are unused placeholders.
    x1 = jax.random.normal(k1, (3, 64), dtype=jnp.float32)
    x2 = jax.random.normal(k2, (3, 64), dtype=jnp.float32)
    x3 = jax.random.normal(k3, (3, 64), dtype=jnp.float32)
    x4 = jax.random.normal(k4, (3, 64), dtype=jnp.float32)

    out = model_forward(x1, x2, x3, x4)
    out = jax.block_until_ready(out)

    # Reference check in plain JAX (mirrors the PyTorch semantics).
    v1 = jnp.concatenate([x1, x2], axis=1)
    v3 = v1[:, 0:2]
    ref = jnp.concatenate([v1, v3], axis=1)

    assert out.shape == (3, 130), out.shape
    assert jnp.allclose(out, ref), "mismatch vs reference"
    print("KERNEL_OK")
</pallas_src>

<mosaic_0001>
module attributes {stable_mosaic.version = 11 : i64} {
  func.func @_cat_kernel(%arg0: memref<3x64xf32, #tpu.memory_space<vmem>>, %arg1: memref<3x64xf32, #tpu.memory_space<vmem>>, %arg2: memref<3x130xf32, #tpu.memory_space<vmem>>) attributes {dimension_semantics = [], scalar_prefetch = 0 : i64, scratch_operands = 0 : i64, tpu.core_type = #tpu.core_type<tc>} {
    %c0 = arith.constant 0 : index
    %c0_0 = arith.constant 0 : index
    %0 = vector.load %arg0[%c0, %c0_0] : memref<3x64xf32, #tpu.memory_space<vmem>>, vector<3x64xf32>
    %c0_1 = arith.constant 0 : index
    %c0_2 = arith.constant 0 : index
    %1 = vector.load %arg1[%c0_1, %c0_2] : memref<3x64xf32, #tpu.memory_space<vmem>>, vector<3x64xf32>
    %c0_3 = arith.constant 0 : index
    %c0_4 = arith.constant 0 : index
    %2 = vector.load %arg0[%c0_3, %c0_4] : memref<3x64xf32, #tpu.memory_space<vmem>>, vector<3x2xf32>
    %3 = tpu.concatenate %0, %1, %2 in 1 : vector<3x64xf32>, vector<3x64xf32>, vector<3x2xf32> -> vector<3x130xf32>
    %c0_5 = arith.constant 0 : index
    %c0_6 = arith.constant 0 : index
    %4 = vector.load %arg2[%c0_5, %c0_6] : memref<3x130xf32, #tpu.memory_space<vmem>>, vector<3x130xf32>
    tpu.vector_store %arg2[%c0_5, %c0_6], %3 {strides = array<i32>} : memref<3x130xf32, #tpu.memory_space<vmem>>, vector<3x130xf32>,
    return
  }
}

</mosaic_0001>

<bundles_post_ra>
// kernel: tpu_custom_call.1
= control target key start
LH: loop header
LB: loop body
LE: loop exit
PB: predicated region body
PF: predicated region fallthrough
CT: control target
= control target key end

     0   :  { %7 = vsyncpa [#allocation3], 0  ;;  %s199_s0 = inlined_call_operand.hbm [shape: f32[3,64], index: 0, kind: input, shape index: {}]   ;;  %s200_s1 = inlined_call_operand.hbm [shape: f32[3,64], index: 1, kind: input, shape index: {}]   ;;  %s201_s2 = inlined_call_operand.hbm [shape: f32[3,130], index: 2, kind: output, shape index: {}]  }
   0x1   :  { %8 = vsyncpa [#allocation6], 0 }
   0x2   :  { %9 = vsyncpa [#allocation4], 0  ;;  %s144_s9 = smov [#allocation2]   ;;  %s145_s11 = smov [#allocation5]  }
   0x3   :  { %s16_s10 = sshll.u32 %s144_s9, 4  ;;  %s26_s12 = sshll.u32 %s145_s11, 4  ;;  %s17_s10 = int_to_ptr.vmem [resolvable:$true] %s16_s10  ;;  %s27_s12 = int_to_ptr.vmem [resolvable:$true] %s26_s12 }
   0x4   :  { %s72_s15 = scalar_lea.hbm %s199_s0, 64 }
   0x5   :  { %p73_p0 = scmp.ne.s32.totalorder %s199_s0, %s72_s15  ;;  %p76_p1 = scmp.lt.u32.totalorder %s72_s15, %s199_s0 }
   0x7   :  { %p78_p2 = pnand %p76_p1, %p73_p0 }
   0x9   :  { %81 = shalt.err (!%p78_p2)
}
   0xa   :  { %s82_s20 = scalar_lea.vmem %s17_s10, 64  ;;  %p87_p4 = scmp.lt.s32.totalorder %s17_s10, %s17_s10 }
   0xb   :  { %p83_p3 = scmp.ne.s32.totalorder %s17_s10, %s82_s20  ;;  %p88_p5 = scmp.lt.s32.totalorder %s82_s20, %s82_s20 }
   0xd   :  { %p89_p6 = por %p88_p5, %p87_p4 }
   0xf   :  { %p90_p7 = pnand %p89_p6, %p83_p3 }
  0x11   :  { %93 = shalt.err (!%p90_p7)
}
  0x12   :  { %19 = dma.hbm_to_vmem [thread:$0]  %s199_s0, 64, %s17_s10, [#allocation3]  }
  0x13   :  { %s94_s25 = scalar_lea.hbm %s200_s1, 64 }
  0x14   :  { %p95_p8 = scmp.ne.s32.totalorder %s200_s1, %s94_s25  ;;  %p98_p9 = scmp.lt.u32.totalorder %s94_s25, %s200_s1 }
  0x16   :  { %p100_p10 = pnand %p98_p9, %p95_p8 }
  0x18   :  { %103 = shalt.err (!%p100_p10)
}
  0x19   :  { %s104_s30 = scalar_lea.vmem %s27_s12, 64  ;;  %p109_p12 = scmp.lt.s32.totalorder %s27_s12, %s27_s12 }
  0x1a   :  { %p105_p11 = scmp.ne.s32.totalorder %s27_s12, %s104_s30  ;;  %p110_p13 = scmp.lt.s32.totalorder %s104_s30, %s104_s30 }
  0x1c   :  { %p111_p0 = por %p110_p13, %p109_p12 }
  0x1e   :  { %p112_p1 = pnand %p111_p0, %p105_p11 }
  0x20   :  { %115 = shalt.err (!%p112_p1)
}
  0x21   :  { %29 = dma.hbm_to_vmem [thread:$0]  %s200_s1, 64, %s27_s12, [#allocation6]  }
  0x22   :  { %138 = dma.done.wait [#allocation3], 64  }
  0x23   :  { %139 = vsyncadd [#allocation3], 4294967232 }
  0x24   :  { %140 = dma.done.wait [#allocation6], 64  }
  0x25   :  { %141 = vsyncadd [#allocation6], 4294967232  ;;  %v37_v0 = vld [vmem:[#allocation5] sm:$0x7]  ;;  %s146_s4 = smov 64   ;;  %vm42_vm0 = vcmask 523264  }
  0x26   :  { %39 = vrot.lane.b32.xlu0 %v37_v0, %s146_s4  ;;  %v36_v1 = vld [vmem:[#allocation2] sm:$0x7]  ;;  %vm48_vm1 = vcmask 1042432   ;;  %vm49_vm2 = vcmask 14340   ;;  %s147_s5 = smov [#allocation7]  }
  0x27   :  { %s58_s6 = sshll.u32 %s147_s5, 4  ;;  %vm50_vm3 = vmor %vm49_vm2, %vm48_vm1  ;;  %s59_s6 = int_to_ptr.vmem [resolvable:$true] %s58_s6 }
  0x28   :  { %s116_s1 = scalar_lea.vmem %s59_s6, 128  ;;  %p121_p3 = scmp.lt.s32.totalorder %s59_s6, %s59_s6 }
  0x29   :  { %p117_p2 = scmp.ne.s32.totalorder %s59_s6, %s116_s1  ;;  %p122_p4 = scmp.lt.s32.totalorder %s116_s1, %s116_s1 }
  0x2b   :  { %p123_p5 = por %p122_p4, %p121_p3 }
  0x2d   :  { %p124_p6 = pnand %p123_p5, %p117_p2 }
  0x98   :  { %v40_v2 = vpop.permute.xlu0 %39 }
  0x99   :  { %v43_v3 = vsel %vm42_vm0, %v36_v1, %v40_v2 }
  0x9a   :  { %v46_v4 = vcombine.low %v43_v3, %v36_v1 }
  0x9c   :  { %51 = vst.msk [vmem:[#allocation7] sm:$0x77] %vm50_vm3, %v46_v4 }
  0x9d   :  { %127 = shalt.err (!%p124_p6)
}
  0x9e   :  { %s128_s9 = scalar_lea.hbm %s201_s2, 128 }
  0x9f   :  { %p129_p7 = scmp.ne.s32.totalorder %s201_s2, %s128_s9  ;;  %p132_p8 = scmp.lt.u32.totalorder %s128_s9, %s201_s2 }
  0xa1   :  { %p134_p9 = pnand %p132_p8, %p129_p7 }
  0xa3   :  { %137 = shalt.err (!%p134_p9)
}
  0xa4   :  { %61 = dma.vmem_to_hbm [thread:$0]  %s59_s6, 128, %s201_s2, [#allocation4]  }
  0xa5   :  { %142 = dma.done.wait [#allocation4], 128  }
  0xa6   :  { %143 = vsyncadd [#allocation4], 4294967168 }
  0xa7   :  { %65 = vsyncpa [#allocation3], 1 }
  0xa8   :  { %66 = vsyncpa [#allocation6], 1 }
  0xa9   :  { %67 = vsyncpa [#allocation4], 1 }

</bundles_post_ra>
